<compile_context>
chip_gen: v7x
topology: tpu7x:2x2x1
jax: 0.10.0
libtpu: 0.0.40
codegen_flags: <defaults>
</compile_context>

<pallas_src>
import jax
import jax.numpy as jnp
from jax.experimental import pallas as pl
from jax.experimental.pallas import tpu as pltpu

# ---- model hyper-parameters (small, consistent with the module) -------------
B = 2               # batch
OUT_CHANNELS = 4    # conv1 out_channels
KERNEL_SIZE = 3     # conv1 kernel_size
L = 16              # input sequence length  (h_w = (L, L) in the module)
PAD = 1
L_OUT = L + 2 * PAD - (KERNEL_SIZE - 1)     # conv_output_shape(...)[1] = 16
FLAT_DIM = OUT_CHANNELS * L_OUT             # 64
FC1 = 32            # fc_1_size
OUT_DIM = 10        # output_shape[0]
OUT_PAD = 128       # lane-dense padded width for the fc2 output / weight


def singleconv1d_kernel(x_ref, wconv_ref, bconv_ref, w1_ref, b1_ref,
                        w2_ref, b2_ref, out_ref, xpad_scr):
    # x_ref    : (B, L)             VMEM  (NCL input with C_in=1 squeezed)
    # wconv_ref: (C*K,)             SMEM  flat conv weights (cheap 1-D scalars)
    # bconv_ref: (C,)               SMEM
    # w1_ref   : (C*L_OUT, FC1)     VMEM  fc1 weight, pre-transposed
    # b1_ref   : (1, FC1)           VMEM
    # w2_ref   : (FC1, OUT_PAD)     VMEM  fc2 weight, transposed + lane-padded
    # b2_ref   : (1, OUT_PAD)       VMEM  lane-padded
    # out_ref  : (B, OUT_PAD)       VMEM  lane-dense output (sliced in wrapper)
    # xpad_scr : (B, L + 2*PAD)     VMEM scratch used for fused zero-padding

    # ---- fused Conv1d padding: zero scratch, drop x into the middle -------
    xpad_scr[...] = jnp.zeros_like(xpad_scr)
    xpad_scr[:, PAD:PAD + L] = x_ref[...]
    xpad = xpad_scr[...]                                     # (B, L + 2*PAD)

    # ---- Conv1d(1->C, K) + ReLU: K shifted scaled adds per channel (VPU) --
    pieces = []
    for c in range(OUT_CHANNELS):                            # static unroll
        acc = wconv_ref[c * KERNEL_SIZE] * xpad[:, 0:L_OUT]
        for t in range(1, KERNEL_SIZE):
            acc = acc + wconv_ref[c * KERNEL_SIZE + t] * xpad[:, t:t + L_OUT]
        pieces.append(jnp.maximum(acc + bconv_ref[c], 0.0))  # ReLU(conv1)

    # PyTorch flatten is channel-major: concatenating the channel rows along
    # lanes gives the (B, C*L_OUT) flattened activation, so fc1 becomes a
    # single (B,64)x(64,FC1) MXU matmul instead of 4 tiny per-channel dots.
    flat = jnp.concatenate(pieces, axis=1)                   # (B, 64)

    h1 = jnp.maximum(
        jnp.dot(flat, w1_ref[...], preferred_element_type=jnp.float32)
        + b1_ref[...], 0.0)                                  # ReLU(fc1)
    out_ref[...] = (jnp.dot(h1, w2_ref[...], preferred_element_type=jnp.float32)
                    + b2_ref[...])                           # fc2 (lane-padded)


def prepare_kernel_params(params):
    """One-time reshapes/transposes/padding so the per-call path is clean."""
    wconv, bconv, w1, b1, w2, b2 = params
    wconv_flat = wconv.reshape(OUT_CHANNELS * KERNEL_SIZE).astype(jnp.float32)
    bconv_k = bconv.astype(jnp.float32)
    w1_k = w1.T.astype(jnp.float32)                      # (C*L_OUT, FC1)
    b1_k = b1.reshape(1, FC1).astype(jnp.float32)
    w2_k = jnp.zeros((FC1, OUT_PAD), jnp.float32).at[:, :OUT_DIM].set(w2.T)
    b2_k = jnp.zeros((1, OUT_PAD), jnp.float32).at[0, :OUT_DIM].set(b2)
    return (wconv_flat, bconv_k, w1_k, b1_k, w2_k, b2_k)


@jax.jit
def singleconv1d_forward(x, kparams):
    """x: (B, 1, L) float32 (PyTorch NCL).  Returns (B, OUT_DIM)."""
    wconv_flat, bconv_k, w1_k, b1_k, w2_k, b2_k = kparams
    x2d = x[:, 0, :]                                     # (B, L), C_in = 1
    out_pad = pl.pallas_call(
        singleconv1d_kernel,
        out_shape=jax.ShapeDtypeStruct((B, OUT_PAD), jnp.float32),
        in_specs=[
            pl.BlockSpec(memory_space=pltpu.MemorySpace.VMEM),   # x
            pl.BlockSpec(memory_space=pltpu.MemorySpace.SMEM),   # conv weight
            pl.BlockSpec(memory_space=pltpu.MemorySpace.SMEM),   # conv bias
            pl.BlockSpec(memory_space=pltpu.MemorySpace.VMEM),   # fc1 weight
            pl.BlockSpec(memory_space=pltpu.MemorySpace.VMEM),   # fc1 bias
            pl.BlockSpec(memory_space=pltpu.MemorySpace.VMEM),   # fc2 weight
            pl.BlockSpec(memory_space=pltpu.MemorySpace.VMEM),   # fc2 bias
        ],
        out_specs=pl.BlockSpec(memory_space=pltpu.MemorySpace.VMEM),
        scratch_shapes=[pltpu.VMEM((B, L + 2 * PAD), jnp.float32)],
    )(x2d, wconv_flat, bconv_k, w1_k, b1_k, w2_k, b2_k)
    return out_pad[:, :OUT_DIM]                          # drop lane padding


def reference_forward(x, params):
    """Pure-JAX mirror of the PyTorch forward for verification."""
    wconv, bconv, w1, b1, w2, b2 = params
    w2d = wconv.reshape(OUT_CHANNELS, KERNEL_SIZE)
    xpad = jnp.pad(x[:, 0, :], ((0, 0), (PAD, PAD)))
    conv = jnp.stack(
        [sum(w2d[c, t] * xpad[:, t:t + L_OUT] for t in range(KERNEL_SIZE))
         + bconv[c] for c in range(OUT_CHANNELS)],
        axis=1)                                          # (B, C, L_OUT)
    conv = jax.nn.relu(conv)
    flat = conv.reshape(B, FLAT_DIM)                     # PyTorch .view order
    h1 = jax.nn.relu(flat @ w1.T + b1)
    return h1 @ w2.T + b2


def init_params(key):
    k = jax.random.split(key, 6)
    wconv = 0.3 * jax.random.normal(k[0], (OUT_CHANNELS, 1, KERNEL_SIZE), jnp.float32)
    bconv = 0.1 * jax.random.normal(k[1], (OUT_CHANNELS,), jnp.float32)
    w1 = 0.1 * jax.random.normal(k[2], (FC1, FLAT_DIM), jnp.float32)
    b1 = 0.1 * jax.random.normal(k[3], (FC1,), jnp.float32)
    w2 = 0.1 * jax.random.normal(k[4], (OUT_DIM, FC1), jnp.float32)
    b2 = 0.1 * jax.random.normal(k[5], (OUT_DIM,), jnp.float32)
    return (wconv, bconv, w1, b1, w2, b2)


if __name__ == "__main__":
    key = jax.random.PRNGKey(0)
    k_x, k_p = jax.random.split(key)
    x = jax.random.normal(k_x, (B, 1, L), jnp.float32)   # PyTorch NCL input
    params = init_params(k_p)
    kparams = prepare_kernel_params(params)              # hoisted, done once

    out = singleconv1d_forward(x, kparams)
    out = jax.block_until_ready(out)

    ref = reference_forward(x, params)
    assert out.shape == (B, OUT_DIM)
    assert jnp.allclose(out, ref, atol=1e-5, rtol=1e-5), (out, ref)
    print("KERNEL_OK")
</pallas_src>

<mosaic_0001>
module attributes {stable_mosaic.version = 11 : i64} {
  func.func @singleconv1d_kernel(%arg0: memref<2x16xf32, #tpu.memory_space<vmem>>, %arg1: memref<12xf32, #tpu.memory_space<smem>>, %arg2: memref<4xf32, #tpu.memory_space<smem>>, %arg3: memref<64x32xf32, #tpu.memory_space<vmem>>, %arg4: memref<1x32xf32, #tpu.memory_space<vmem>>, %arg5: memref<32x128xf32, #tpu.memory_space<vmem>>, %arg6: memref<1x128xf32, #tpu.memory_space<vmem>>, %arg7: memref<2x128xf32, #tpu.memory_space<vmem>>, %arg8: memref<2x18xf32, #tpu.memory_space<vmem>>) attributes {dimension_semantics = [], scalar_prefetch = 0 : i64, scratch_operands = 1 : i64, tpu.core_type = #tpu.core_type<tc>} {
    %cst = arith.constant 0.000000e+00 : f32
    %0 = vector.broadcast %cst : f32 to vector<2x18xf32>
    %c0 = arith.constant 0 : index
    %c0_0 = arith.constant 0 : index
    %1 = vector.load %arg8[%c0, %c0_0] : memref<2x18xf32, #tpu.memory_space<vmem>>, vector<2x18xf32>
    tpu.vector_store %arg8[%c0, %c0_0], %0 {strides = array<i32>} : memref<2x18xf32, #tpu.memory_space<vmem>>, vector<2x18xf32>,
    %c0_1 = arith.constant 0 : index
    %c0_2 = arith.constant 0 : index
    %2 = vector.load %arg0[%c0_1, %c0_2] : memref<2x16xf32, #tpu.memory_space<vmem>>, vector<2x16xf32>
    %c0_3 = arith.constant 0 : index
    %c1 = arith.constant 1 : index
    %3 = vector.load %arg8[%c0_3, %c1] : memref<2x18xf32, #tpu.memory_space<vmem>>, vector<2x16xf32>
    tpu.vector_store %arg8[%c0_3, %c1], %2 {strides = array<i32>} : memref<2x18xf32, #tpu.memory_space<vmem>>, vector<2x16xf32>,
    %c0_4 = arith.constant 0 : index
    %c0_5 = arith.constant 0 : index
    %4 = vector.load %arg8[%c0_4, %c0_5] : memref<2x18xf32, #tpu.memory_space<vmem>>, vector<2x18xf32>
    %c0_6 = arith.constant 0 : index
    %5 = memref.load %arg1[%c0_6] : memref<12xf32, #tpu.memory_space<smem>>
    %6 = vector.extract_strided_slice %4 {offsets = [0, 0], sizes = [2, 16], strides = [1, 1]} : vector<2x18xf32> to vector<2x16xf32>
    %7 = vector.broadcast %5 : f32 to vector<2x16xf32>
    %8 = arith.mulf %7, %6 : vector<2x16xf32>
    %c1_7 = arith.constant 1 : index
    %9 = memref.load %arg1[%c1_7] : memref<12xf32, #tpu.memory_space<smem>>
    %10 = vector.extract_strided_slice %4 {offsets = [0, 1], sizes = [2, 16], strides = [1, 1]} : vector<2x18xf32> to vector<2x16xf32>
    %11 = vector.broadcast %9 : f32 to vector<2x16xf32>
    %12 = arith.mulf %11, %10 : vector<2x16xf32>
    %13 = arith.addf %8, %12 : vector<2x16xf32>
    %c2 = arith.constant 2 : index
    %14 = memref.load %arg1[%c2] : memref<12xf32, #tpu.memory_space<smem>>
    %15 = vector.extract_strided_slice %4 {offsets = [0, 2], sizes = [2, 16], strides = [1, 1]} : vector<2x18xf32> to vector<2x16xf32>
    %16 = vector.broadcast %14 : f32 to vector<2x16xf32>
    %17 = arith.mulf %16, %15 : vector<2x16xf32>
    %18 = arith.addf %13, %17 : vector<2x16xf32>
    %c0_8 = arith.constant 0 : index
    %19 = memref.load %arg2[%c0_8] : memref<4xf32, #tpu.memory_space<smem>>
    %20 = vector.broadcast %19 : f32 to vector<2x16xf32>
    %21 = arith.addf %18, %20 : vector<2x16xf32>
    %cst_9 = arith.constant 0.000000e+00 : f32
    %22 = vector.broadcast %cst_9 : f32 to vector<2x16xf32>
    %23 = arith.maximumf %21, %22 : vector<2x16xf32>
    %c3 = arith.constant 3 : index
    %24 = memref.load %arg1[%c3] : memref<12xf32, #tpu.memory_space<smem>>
    %25 = vector.extract_strided_slice %4 {offsets = [0, 0], sizes = [2, 16], strides = [1, 1]} : vector<2x18xf32> to vector<2x16xf32>
    %26 = vector.broadcast %24 : f32 to vector<2x16xf32>
    %27 = arith.mulf %26, %25 : vector<2x16xf32>
    %c4 = arith.constant 4 : index
    %28 = memref.load %arg1[%c4] : memref<12xf32, #tpu.memory_space<smem>>
    %29 = vector.extract_strided_slice %4 {offsets = [0, 1], sizes = [2, 16], strides = [1, 1]} : vector<2x18xf32> to vector<2x16xf32>
    %30 = vector.broadcast %28 : f32 to vector<2x16xf32>
    %31 = arith.mulf %30, %29 : vector<2x16xf32>
    %32 = arith.addf %27, %31 : vector<2x16xf32>
    %c5 = arith.constant 5 : index
    %33 = memref.load %arg1[%c5] : memref<12xf32, #tpu.memory_space<smem>>
    %34 = vector.extract_strided_slice %4 {offsets = [0, 2], sizes = [2, 16], strides = [1, 1]} : vector<2x18xf32> to vector<2x16xf32>
    %35 = vector.broadcast %33 : f32 to vector<2x16xf32>
    %36 = arith.mulf %35, %34 : vector<2x16xf32>
    %37 = arith.addf %32, %36 : vector<2x16xf32>
    %c1_10 = arith.constant 1 : index
    %38 = memref.load %arg2[%c1_10] : memref<4xf32, #tpu.memory_space<smem>>
    %39 = vector.broadcast %38 : f32 to vector<2x16xf32>
    %40 = arith.addf %37, %39 : vector<2x16xf32>
    %cst_11 = arith.constant 0.000000e+00 : f32
    %41 = vector.broadcast %cst_11 : f32 to vector<2x16xf32>
    %42 = arith.maximumf %40, %41 : vector<2x16xf32>
    %c6 = arith.constant 6 : index
    %43 = memref.load %arg1[%c6] : memref<12xf32, #tpu.memory_space<smem>>
    %44 = vector.extract_strided_slice %4 {offsets = [0, 0], sizes = [2, 16], strides = [1, 1]} : vector<2x18xf32> to vector<2x16xf32>
    %45 = vector.broadcast %43 : f32 to vector<2x16xf32>
    %46 = arith.mulf %45, %44 : vector<2x16xf32>
    %c7 = arith.constant 7 : index
    %47 = memref.load %arg1[%c7] : memref<12xf32, #tpu.memory_space<smem>>
    %48 = vector.extract_strided_slice %4 {offsets = [0, 1], sizes = [2, 16], strides = [1, 1]} : vector<2x18xf32> to vector<2x16xf32>
    %49 = vector.broadcast %47 : f32 to vector<2x16xf32>
    %50 = arith.mulf %49, %48 : vector<2x16xf32>
    %51 = arith.addf %46, %50 : vector<2x16xf32>
    %c8 = arith.constant 8 : index
    %52 = memref.load %arg1[%c8] : memref<12xf32, #tpu.memory_space<smem>>
    %53 = vector.extract_strided_slice %4 {offsets = [0, 2], sizes = [2, 16], strides = [1, 1]} : vector<2x18xf32> to vector<2x16xf32>
    %54 = vector.broadcast %52 : f32 to vector<2x16xf32>
    %55 = arith.mulf %54, %53 : vector<2x16xf32>
    %56 = arith.addf %51, %55 : vector<2x16xf32>
    %c2_12 = arith.constant 2 : index
    %57 = memref.load %arg2[%c2_12] : memref<4xf32, #tpu.memory_space<smem>>
    %58 = vector.broadcast %57 : f32 to vector<2x16xf32>
    %59 = arith.addf %56, %58 : vector<2x16xf32>
    %cst_13 = arith.constant 0.000000e+00 : f32
    %60 = vector.broadcast %cst_13 : f32 to vector<2x16xf32>
    %61 = arith.maximumf %59, %60 : vector<2x16xf32>
    %c9 = arith.constant 9 : index
    %62 = memref.load %arg1[%c9] : memref<12xf32, #tpu.memory_space<smem>>
    %63 = vector.extract_strided_slice %4 {offsets = [0, 0], sizes = [2, 16], strides = [1, 1]} : vector<2x18xf32> to vector<2x16xf32>
    %64 = vector.broadcast %62 : f32 to vector<2x16xf32>
    %65 = arith.mulf %64, %63 : vector<2x16xf32>
    %c10 = arith.constant 10 : index
    %66 = memref.load %arg1[%c10] : memref<12xf32, #tpu.memory_space<smem>>
    %67 = vector.extract_strided_slice %4 {offsets = [0, 1], sizes = [2, 16], strides = [1, 1]} : vector<2x18xf32> to vector<2x16xf32>
    %68 = vector.broadcast %66 : f32 to vector<2x16xf32>
    %69 = arith.mulf %68, %67 : vector<2x16xf32>
    %70 = arith.addf %65, %69 : vector<2x16xf32>
    %c11 = arith.constant 11 : index
    %71 = memref.load %arg1[%c11] : memref<12xf32, #tpu.memory_space<smem>>
    %72 = vector.extract_strided_slice %4 {offsets = [0, 2], sizes = [2, 16], strides = [1, 1]} : vector<2x18xf32> to vector<2x16xf32>
    %73 = vector.broadcast %71 : f32 to vector<2x16xf32>
    %74 = arith.mulf %73, %72 : vector<2x16xf32>
    %75 = arith.addf %70, %74 : vector<2x16xf32>
    %c3_14 = arith.constant 3 : index
    %76 = memref.load %arg2[%c3_14] : memref<4xf32, #tpu.memory_space<smem>>
    %77 = vector.broadcast %76 : f32 to vector<2x16xf32>
    %78 = arith.addf %75, %77 : vector<2x16xf32>
    %cst_15 = arith.constant 0.000000e+00 : f32
    %79 = vector.broadcast %cst_15 : f32 to vector<2x16xf32>
    %80 = arith.maximumf %78, %79 : vector<2x16xf32>
    %81 = tpu.concatenate %23, %42, %61, %80 in 1 : vector<2x16xf32>, vector<2x16xf32>, vector<2x16xf32>, vector<2x16xf32> -> vector<2x64xf32>
    %c0_16 = arith.constant 0 : index
    %c0_17 = arith.constant 0 : index
    %82 = vector.load %arg3[%c0_16, %c0_17] : memref<64x32xf32, #tpu.memory_space<vmem>>, vector<64x32xf32>
    %cst_18 = arith.constant dense<0.000000e+00> : vector<2x32xf32>
    %83 = tpu.matmul %81, %82, %cst_18 {dimension_numbers = #tpu.dot_dimension_numbers<[1], [0], [0], [1], [0, 0, 1, 1], [], []>} : vector<2x64xf32>, vector<64x32xf32>, vector<2x32xf32> -> vector<2x32xf32>
    %c0_19 = arith.constant 0 : index
    %c0_20 = arith.constant 0 : index
    %84 = vector.load %arg4[%c0_19, %c0_20] : memref<1x32xf32, #tpu.memory_space<vmem>>, vector<1x32xf32>
    %85 = vector.broadcast %84 : vector<1x32xf32> to vector<2x32xf32>
    %86 = arith.addf %83, %85 : vector<2x32xf32>
    %cst_21 = arith.constant 0.000000e+00 : f32
    %87 = vector.broadcast %cst_21 : f32 to vector<2x32xf32>
    %88 = arith.maximumf %86, %87 : vector<2x32xf32>
    %c0_22 = arith.constant 0 : index
    %c0_23 = arith.constant 0 : index
    %89 = vector.load %arg5[%c0_22, %c0_23] : memref<32x128xf32, #tpu.memory_space<vmem>>, vector<32x128xf32>
    %cst_24 = arith.constant dense<0.000000e+00> : vector<2x128xf32>
    %90 = tpu.matmul %88, %89, %cst_24 {dimension_numbers = #tpu.dot_dimension_numbers<[1], [0], [0], [1], [0, 0, 1, 1], [], []>} : vector<2x32xf32>, vector<32x128xf32>, vector<2x128xf32> -> vector<2x128xf32>
    %c0_25 = arith.constant 0 : index
    %c0_26 = arith.constant 0 : index
    %91 = vector.load %arg6[%c0_25, %c0_26] : memref<1x128xf32, #tpu.memory_space<vmem>>, vector<1x128xf32>
    %92 = vector.broadcast %91 : vector<1x128xf32> to vector<2x128xf32>
    %93 = arith.addf %90, %92 : vector<2x128xf32>
    %c0_27 = arith.constant 0 : index
    %c0_28 = arith.constant 0 : index
    %94 = vector.load %arg7[%c0_27, %c0_28] : memref<2x128xf32, #tpu.memory_space<vmem>>, vector<2x128xf32>
    tpu.vector_store %arg7[%c0_27, %c0_28], %93 {strides = array<i32>} : memref<2x128xf32, #tpu.memory_space<vmem>>, vector<2x128xf32>,
    return
  }
}

</mosaic_0001>

<bundles_post_ra>
// kernel: singleconv1d_forward.1
= control target key start
LH: loop header
LB: loop body
LE: loop exit
PB: predicated region body
PF: predicated region fallthrough
CT: control target
= control target key end

     0   :  { %12 = vsyncpa [#allocation5], 0  ;;  %s651_s0 = inlined_call_operand.vmem [shape: f32[2,16], index: 0, kind: input, shape index: {}]   ;;  %s652_s1 = inlined_call_operand.vmem [shape: f32[12], index: 1, kind: input, shape index: {}]   ;;  %s653_s2 = inlined_call_operand.vmem [shape: f32[4], index: 2, kind: input, shape index: {}]   ;;  %s654_s3 = inlined_call_operand.vmem [shape: f32[64,32], index: 3, kind: input, shape index: {}]   ;;  %s655_s4 = inlined_call_operand.vmem [shape: f32[1,32], index: 4, kind: input, shape index: {}]   ;;  %s656_s5 = inlined_call_operand.vmem [shape: f32[32,128], index: 5, kind: input, shape index: {}]   ;;  %s657_s6 = inlined_call_operand.vmem [shape: f32[1,128], index: 6, kind: input, shape index: {}]   ;;  %s658_s7 = inlined_call_operand.hbm [shape: f32[2,128], index: 7, kind: output, shape index: {}]  }
   0x1   :  { %13 = vsyncpa [#allocation7], 0 }
   0x2   :  { %14 = vsyncpa [#allocation4], 0  ;;  %s23_s26 = sshll.u32 %s652_s1, 4  ;;  %s33_s29 = sshll.u32 %s653_s2, 4  ;;  %s24_s26 = int_to_ptr.vmem [resolvable:$true] %s23_s26  ;;  %s34_s29 = int_to_ptr.vmem [resolvable:$true] %s33_s29 }
   0x3   :  { %s455_s30 = scalar_lea.vmem %s24_s26, 16  ;;  %p460_p1 = scmp.lt.s32.totalorder %s24_s26, %s24_s26 }
   0x4   :  { %p456_p0 = scmp.ne.s32.totalorder %s24_s26, %s455_s30  ;;  %p461_p2 = scmp.lt.s32.totalorder %s455_s30, %s455_s30 }
   0x6   :  { %p462_p3 = por %p461_p2, %p460_p1 }
   0x8   :  { %p463_p4 = pnand %p462_p3, %p456_p0 }
   0xa   :  { %466 = shalt.err (!%p463_p4)
}
   0xb   :  { %s507_s8 = smov [#allocation3]   ;;  %s467_s9 = scalar_lea.vmem %s34_s29, 16 }
   0xc   :  { %26 = dma.vmem_to_smem %s24_s26, 16, %s507_s8, [#allocation5]  }
   0xd   :  { %p468_p5 = scmp.ne.s32.totalorder %s34_s29, %s467_s9  ;;  %p472_p6 = scmp.lt.s32.totalorder %s34_s29, %s34_s29 }
   0xe   :  { %p473_p7 = scmp.lt.s32.totalorder %s467_s9, %s467_s9 }
  0x10   :  { %p474_p8 = por %p473_p7, %p472_p6 }
  0x12   :  { %p475_p9 = pnand %p474_p8, %p468_p5 }
  0x14   :  { %478 = shalt.err (!%p475_p9)
}
  0x15   :  { %s508_s1 = smov [#allocation6]  }
  0x16   :  { %36 = dma.vmem_to_smem %s34_s29, 16, %s508_s1, [#allocation7]  }
  0x17   :  { %501 = dma.done.wait [#allocation5], 16  }
  0x18   :  { %502 = vsyncadd [#allocation5], 4294967280 }
  0x19   :  { %503 = dma.done.wait [#allocation7], 16  }
  0x1a   :  { %504 = vsyncadd [#allocation7], 4294967280 }
  0x1b   :  { %51 = sfence }
  0x1c   :  { %v54_v0 = vld [vmem:[%s651_s0] sm:$0x3]  ;;  %vm52_vm0 = vcmask 140288   ;;  %s509_s11 = smov 1   ;;  %v510_v1 = vmov 0.0   ;;  %vm59_vm1 = vcmask 132104  }
  0x1d   :  { %56 = vrot.lane.b32.xlu0 %v54_v0, %s509_s11  ;;  %53 = vst.msk [vmem:[#allocation2] sm:$0x3] %vm52_vm0, %v510_v1  ;;  %s370_s12 = sld [smem:[#allocation3 + $0x7]]  ;;  %s366_s13 = sld [smem:[#allocation3 + $0x4]]  ;;  %v172_v14 = vld [vmem:[%s654_s3] sm:$0xff]  ;;  %v173_v15 = vld [vmem:[%s654_s3 + $0x8] sm:$0xff] }
  0x1e   :  { %s367_s14 = sld [smem:[#allocation3 + $0x5]]  ;;  %s374_s15 = sld [smem:[#allocation3 + $0xa]]  ;;  %v513_v18 = vmov 0.0|0.0   ;;  %v426_v19 = vpack.c.bf16 %v173_v15, %v172_v14  ;;  %v174_v20 = vld [vmem:[%s654_s3 + $0x10] sm:$0xff]  ;;  %v175_v21 = vld [vmem:[%s654_s3 + $0x18] sm:$0xff]  ;;  %v176_v27 = vld [vmem:[%s654_s3 + $0x20] sm:$0xff] }
  0x1f   :  { %s371_s16 = sld [smem:[#allocation3 + $0x8]]  ;;  %s375_s17 = sld [smem:[#allocation3 + $0xb]]  ;;  %425 = vmatprep.subr.bf16.mxu0 %v513_v18  ;;  %437 = vmatprep.subr.bf16.mxu1 %v513_v18  ;;  %v429_v24 = vpack.c.bf16 %v175_v21, %v174_v20  ;;  %v177_v28 = vld [vmem:[%s654_s3 + $0x28] sm:$0xff]  ;;  %v178_v31 = vld [vmem:[%s654_s3 + $0x30] sm:$0xff]  ;;  %v179_v32 = vld [vmem:[%s654_s3 + $0x38] sm:$0xff]  ;;  %vm514_vm2 = vmmov 0  }
  0x20   :  { %s364_s0 = sld [smem:[#allocation3 + $0x2]]  ;;  %s363_s18 = sld [smem:[#allocation3 + $0x1]]  ;;  %427 = vmatpush3.bf16.msra.mxu0 %v426_v19  ;;  %v432_v29 = vpack.c.bf16 %v177_v28, %v176_v27  ;;  %v435_v33 = vpack.c.bf16 %v179_v32, %v178_v31  ;;  %411 = vmatprep.mubr.msk.f32.mxu0 %vm514_vm2, %v510_v1  ;;  %v262_v43 = vld [vmem:[%s656_s5] sm:$0xff]  ;;  %v263_v44 = vld [vmem:[%s656_s5 + $0x8] sm:$0xff]  ;;  %vm166_vm3 = vcmask 130048   ;;  %vm168_vm4 = vcmask 261120  }
  0x21   :  { %s511_s19 = smov 127   ;;  %s512_s20 = smov 126   ;;  %428 = vmatprep.subr.bf16.mxu0 %v513_v18  ;;  %422 = vmatprep.mubr.msk.f32.mxu1 %vm514_vm2, %v510_v1  ;;  %v438_v48 = vpack.c.bf16 %v263_v44, %v262_v43  ;;  %vm170_vm5 = vcmask 392192   ;;  %vm187_vm6 = vcmask 523264   ;;  %v265_v15 = vld [vmem:[%s656_s5 + $0x18] sm:$0xff] }
  0x22   :  { %s365_s1 = sld [smem:[#allocation3 + $0x3]]  ;;  %s369_s2 = sld [smem:[#allocation3 + $0x6]] }
  0x23   :  { %v112_v3 = vstv %s370_s12  ;;  %v89_v4 = vstv %s366_s13  ;;  %s373_s10 = sld [smem:[#allocation3 + $0x9]]  ;;  %439 = vmatpush3.bf16.msra.mxu1 %v438_v48  ;;  %s516_s21 = smov 32  }
  0x24   :  { %v97_v8 = vstv %s367_s14  ;;  %v135_v9 = vstv %s374_s15  ;;  %430 = vmatpush3.bf16.msra.mxu0 %v429_v24  ;;  %s368_s11 = sld [smem:[#allocation6 + $0x1]]  ;;  %440 = vmatprep.subr.bf16.mxu1 %v513_v18  ;;  %s517_s22 = smov 48  }
  0x25   :  { %v120_v12 = vstv %s371_s16  ;;  %v143_v13 = vstv %s375_s17  ;;  %431 = vmatprep.subr.bf16.mxu0 %v513_v18  ;;  %s607_s16 = sld [smem:[#allocation6 + $0x2]]  ;;  %s609_s17 = sld [smem:[#allocation6 + $0x3]] }
  0x26   :  { %v74_v22 = vstv %s364_s0  ;;  %v66_v23 = vstv %s363_s18  ;;  %s62_s23 = sld [smem:[#allocation3]] }
  0x27   :  { %s81_s24 = sld [smem:[#allocation6]] }
  0x28   :  { %433 = vmatpush3.bf16.msra.mxu0 %v432_v29  ;;  %v86_v30 = vstv %s365_s1  ;;  %v109_v37 = vstv %s369_s2  ;;  %s518_s1 = smov [#allocation8]  }
  0x29   :  { %434 = vmatprep.subr.bf16.mxu0 %v513_v18  ;;  %v132_v38 = vstv %s373_s10  ;;  %s353_s2 = sshll.u32 %s518_s1, 4  ;;  %s354_s2 = int_to_ptr.vmem [resolvable:$true] %s353_s2 }
  0x2a   :  { %v105_v40 = vstv %s368_s11  ;;  %p484_p11 = scmp.lt.s32.totalorder %s354_s2, %s354_s2 }
  0x2b   :  { %v128_v52 = vstv %s607_s16  ;;  %v151_v54 = vstv %s609_s17 }
  0x2c   :  { %436 = vmatpush3.bf16.msra.mxu0 %v435_v33  ;;  %v63_v63 = vstv %s62_s23 }
  0x8f   :  { %v57_v2 = vpop.permute.xlu0 %56 }
  0x90   :  { %60 = vst.msk [vmem:[#allocation2] sm:$0x3] %vm59_vm1, %v57_v2 }
  0x97   :  { %v569_v5 = vld [vmem:[#allocation2] sm:$0x3] }
  0x98   :  { %v113_v6 = vmul.f32 %v112_v3, %v569_v5  ;;  %v90_v7 = vmul.f32 %v89_v4, %v569_v5  ;;  %v98_v10 = vmul.f32 %v97_v8, %v569_v5  ;;  %v136_v11 = vmul.f32 %v135_v9, %v569_v5 }
  0x99   :  { %v121_v16 = vmul.f32 %v120_v12, %v569_v5  ;;  %v144_v17 = vmul.f32 %v143_v13, %v569_v5  ;;  %v75_v25 = vmul.f32 %v74_v22, %v569_v5  ;;  %v67_v26 = vmul.f32 %v66_v23, %v569_v5  ;;  %v379_v22 = vld [vmem:[%s657_s6] ss:$0 sm:$0xff] }
  0x9a   :  { %115 = vrot.lane.b32.xlu1 %v113_v6, %s511_s19  ;;  %92 = vrot.lane.b32.xlu0 %v90_v7, %s511_s19  ;;  %v87_v36 = vmul.f32 %v86_v30, %v569_v5  ;;  %v110_v45 = vmul.f32 %v109_v37, %v569_v5  ;;  %v133_v47 = vmul.f32 %v132_v38, %v569_v5  ;;  %v82_v6 = vstv %s81_s24 }
  0x9b   :  { %v64_v1 = vmul.f32 %v63_v63, %v569_v5  ;;  %v264_v5 = vld [vmem:[%s656_s5 + $0x10] sm:$0xff]  ;;  %s479_s5 = scalar_lea.vmem %s354_s2, 32 }
  0x9c   :  { %p480_p10 = scmp.ne.s32.totalorder %s354_s2, %s479_s5  ;;  %p485_p12 = scmp.lt.s32.totalorder %s479_s5, %s479_s5 }
  0x9e   :  { %100 = vrot.lane.b32.xlu1 %v98_v10, %s512_s20  ;;  %138 = vrot.lane.b32.xlu0 %v136_v11, %s511_s19  ;;  %p486_p13 = por %p485_p12, %p484_p11 }
  0xa0   :  { %p487_p0 = pnand %p486_p13, %p480_p10 }
  0xa2   :  { %123 = vrot.lane.b32.xlu1 %v121_v16, %s512_s20  ;;  %146 = vrot.lane.b32.xlu0 %v144_v17, %s512_s20  ;;  %v441_v16 = vpack.c.bf16 %v265_v15, %v264_v5  ;;  %v377_v17 = vld [vmem:[%s655_s4] ss:$0 sm:$0xff] }
  0xa4   :  { %442 = vmatpush3.bf16.msra.mxu1 %v441_v16 }
  0xa6   :  { %77 = vrot.lane.b32.xlu0 %v75_v25, %s512_s20  ;;  %69 = vrot.lane.b32.xlu1 %v67_v26, %s511_s19  ;;  %s515_s20 = smov 16  }
 0x10c   :  { %v116_v34 = vpop.permute.xlu1 %115  ;;  %v93_v35 = vpop.permute.xlu0 %92 }
 0x10d   :  { %v95_v39 = vadd.f32 %v93_v35, %v87_v36  ;;  %v118_v49 = vadd.f32 %v116_v34, %v110_v45 }
 0x110   :  { %v101_v41 = vpop.permute.xlu1 %100  ;;  %v139_v42 = vpop.permute.xlu0 %138 }
 0x111   :  { %v103_v46 = vadd.f32 %v101_v41, %v95_v39  ;;  %v141_v51 = vadd.f32 %v139_v42, %v133_v47 }
 0x113   :  { %v106_v50 = vadd.f32 %v105_v40, %v103_v46 }
 0x114   :  { %v124_v53 = vpop.permute.xlu1 %123  ;;  %v147_v55 = vpop.permute.xlu0 %146 }
 0x115   :  { %v107_v56 = vmax.f32 %v106_v50, 0.0  ;;  %v126_v57 = vadd.f32 %v124_v53, %v118_v49  ;;  %v149_v58 = vadd.f32 %v147_v55, %v141_v51 }
 0x117   :  { %v129_v59 = vadd.f32 %v128_v52, %v126_v57  ;;  %v152_v60 = vadd.f32 %v151_v54, %v149_v58  ;;  %155 = vrot.lane.b32.xlu1 %v107_v56, %s515_s20 }
 0x118   :  { %v70_v0 = vpop.permute.xlu1 %69  ;;  %v78_v3 = vpop.permute.xlu0 %77 }
 0x119   :  { %v130_v61 = vmax.f32 %v129_v59, 0.0  ;;  %v153_v62 = vmax.f32 %v152_v60, 0.0  ;;  %v72_v2 = vadd.f32 %v70_v0, %v64_v1 }
 0x11b   :  { %159 = vrot.lane.b32.xlu0 %v130_v61, %s516_s21  ;;  %163 = vrot.lane.b32.xlu1 %v153_v62, %s517_s22  ;;  %v80_v4 = vadd.f32 %v78_v3, %v72_v2 }
 0x11d   :  { %v83_v7 = vadd.f32 %v82_v6, %v80_v4 }
 0x11f   :  { %v84_v9 = vmax.f32 %v83_v7, 0.0 }
 0x189   :  { %v156_v8 = vpop.permute.xlu1 %155 }
 0x18a   :  { %v167_v10 = vsel %vm166_vm3, %v84_v9, %v156_v8 }
 0x18d   :  { %v160_v11 = vpop.permute.xlu0 %159  ;;  %v164_v12 = vpop.permute.xlu1 %163 }
 0x18e   :  { %v169_v13 = vsel %vm168_vm4, %v167_v10, %v160_v11 }
 0x18f   :  { %v171_v14 = vsel %vm170_vm5, %v169_v13, %v164_v12 }
 0x190   :  { %412 = vmatmul.mubr.msk.f32.vlgmr.msra.gmra.mrb[0].mxu0 %vm187_vm6, %v171_v14 }
 0x263   :  { %v257_v18 = vpop.f32.mrb[0].mxu0 }
 0x264   :  { %v258_v19 = vadd.f32 %v377_v17, %v257_v18  ;;  %v413_v20 = vpop.f32.mrb[1].mxu0 }
 0x266   :  { %v261_v21 = vmax.f32 %v258_v19, 0.0 }
 0x268   :  { %423 = vmatmul.mubr.msk.f32.vlgmr.msra.gmra.mrb[0].mxu1 %vm168_vm4, %v261_v21 }
 0x33b   :  { %v342_v23 = vpop.f32.mrb[0].mxu1 }
 0x33c   :  { %v343_v24 = vadd.f32 %v379_v22, %v342_v23  ;;  %v424_v25 = vpop.f32.mrb[1].mxu1 }
 0x33e   :  { %346 = vst [vmem:[#allocation8] sm:$0x3] %v343_v24 }
 0x33f   :  { %490 = shalt.err (!%p487_p0)
}
 0x340   :  { %s491_s11 = scalar_lea.hbm %s658_s7, 32 }
 0x341   :  { %p492_p1 = scmp.ne.s32.totalorder %s658_s7, %s491_s11  ;;  %p495_p2 = scmp.lt.u32.totalorder %s491_s11, %s658_s7 }
 0x343   :  { %p497_p3 = pnand %p495_p2, %p492_p1 }
 0x345   :  { %500 = shalt.err (!%p497_p3)
}
 0x346   :  { %356 = dma.vmem_to_hbm [thread:$0]  %s354_s2, 32, %s658_s7, [#allocation4]  }
 0x347   :  { %505 = dma.done.wait [#allocation4], 32  }
 0x348   :  { %506 = vsyncadd [#allocation4], 4294967264 }
 0x349   :  { %360 = vsyncpa [#allocation4], 1 }
 0x34a   :  { %361 = vsyncpa [#allocation5], 1 }
 0x34b   :  { %362 = vsyncpa [#allocation7], 1 }

</bundles_post_ra>
